<compile_context>
chip_gen: v6e
topology: v6e:2x2x1
jax: 0.10.0
libtpu: 0.0.40
codegen_flags: <defaults>
</compile_context>

<pallas_src>
import jax
import jax.numpy as jnp
from jax.experimental import pallas as pl
from jax.experimental.pallas import tpu as pltpu


def _spatial_attention_kernel(x_ref, m1_ref, k3_ref, bs_ref, vs_ref, out_ref):
    bt, n, _ = out_ref.shape          # (Bt, N, N)
    x2 = x_ref[...]                   # (Bt*N, F*T)
    m1 = m1_ref[...]                  # (F*T, T)
    k3 = k3_ref[...]                  # (F*T, T)
    bs = bs_ref[...]                  # (N, N)
    vs = vs_ref[...]                  # (N, N)
    t = m1.shape[1]

    # lhs = (x . W1) @ W2 and rhs = W3 . x as single 2-D matmuls with M = Bt*N.
    lhs = jnp.dot(x2, m1, preferred_element_type=jnp.float32)   # (Bt*N, T)
    rhs = jnp.dot(x2, k3, preferred_element_type=jnp.float32)   # (Bt*N, T)
    lhs = lhs.reshape(bt, n, t)                                  # leading-dim split (free)
    rhs = rhs.reshape(bt, n, t)

    # product[b] = lhs[b] @ rhs[b].T : contract T directly, no materialized transpose.
    product = jax.lax.dot_general(
        lhs, rhs, (((2,), (2,)), ((0,), (0,))),
        preferred_element_type=jnp.float32)                      # (Bt, N, N)

    sig = jax.nn.sigmoid(product + bs[None])                     # (Bt, N, N)

    # S[b] = Vs @ sigmoid(product[b] + bs)
    vs_b = jnp.broadcast_to(vs, (bt, n, n))                      # hoisted once per step
    s = jax.lax.dot_general(
        vs_b, sig, (((2,), (1,)), ((0,), (0,))),
        preferred_element_type=jnp.float32)                      # (Bt, N, N)

    # softmax over dim=1 of (B, N, N)
    m = jnp.max(s, axis=1, keepdims=True)
    e = jnp.exp(s - m)
    denom = jnp.sum(e, axis=1, keepdims=True)
    out_ref[...] = e * pl.reciprocal(denom, approx=True)


def _round_up(v, m):
    return -(-v // m) * m


def _choose_block_b(B, N, F, T, vmem_budget_bytes):
    """Batch-tile size from the (8,128)-tiled (padded) per-batch VMEM footprint."""
    lane, sub = 128, 8
    x_tile = _round_up(N, sub) * _round_up(F * T, lane) * 4     # x rows for one batch elem
    out_tile = _round_up(N, sub) * _round_up(N, lane) * 4       # (N, N) output slab
    interm = 6 * _round_up(N, sub) * lane * 4                   # lhs/rhs/product/sig/S/exp
    per_b = 2 * x_tile + 2 * out_tile + interm                  # in/out double-buffered
    bt = max(1, vmem_budget_bytes // per_b)
    # Keep >= ~8 grid steps so pipelining engages and v7x's two cores stay balanced.
    bt = min(bt, max(1, pl.cdiv(B, 8)))
    return int(min(bt, B))


def spatial_attention(x, w1, w2, w3, bs, vs, *, block_b=None,
                      vmem_budget_bytes=8 * 1024 * 1024):
    B, N, F, T = x.shape
    FT = F * T
    if block_b is None:
        block_b = _choose_block_b(B, N, F, T, vmem_budget_bytes)
    grid_b = pl.cdiv(B, block_b)
    b_pad = grid_b * block_b

    # Fold the weights (wrapper-side, tiny):
    #   M1[f*T+t, tau] = W1[t] * W2[f, tau]
    #   K3[f*T+t, tau] = W3[f] * I[t, tau]
    w1 = w1.astype(jnp.float32)
    w2 = w2.astype(jnp.float32)
    w3 = w3.astype(jnp.float32)
    m1 = (w2[:, None, :] * w1[None, :, None]).reshape(FT, T)
    k3 = (w3[:, None, None] * jnp.eye(T, dtype=jnp.float32)[None]).reshape(FT, T)

    # Row-flatten x; pad batch (independent slabs, sliced off afterwards).
    x2d = x.reshape(B * N, FT)
    if b_pad != B:
        x2d = jnp.pad(x2d, ((0, (b_pad - B) * N), (0, 0)))

    out = pl.pallas_call(
        _spatial_attention_kernel,
        out_shape=jax.ShapeDtypeStruct((b_pad, N, N), jnp.float32),
        grid=(grid_b,),
        in_specs=[
            pl.BlockSpec((block_b * N, FT), lambda b: (b, 0)),   # x tile (contiguous)
            pl.BlockSpec((FT, T), lambda b: (0, 0)),             # M1
            pl.BlockSpec((FT, T), lambda b: (0, 0)),             # K3
            pl.BlockSpec((N, N), lambda b: (0, 0)),              # bs (leading 1 dropped)
            pl.BlockSpec((N, N), lambda b: (0, 0)),              # Vs
        ],
        out_specs=pl.BlockSpec((block_b, N, N), lambda b: (b, 0, 0)),
        compiler_params=pltpu.CompilerParams(
            dimension_semantics=("parallel",),
            vmem_limit_bytes=32 * 1024 * 1024),
    )(x2d, m1, k3, bs.reshape(N, N), vs)

    return out[:B] if b_pad != B else out


def spatial_attention_reference(x, w1, w2, w3, bs, vs):
    """Pure-JAX reference mirroring the PyTorch forward exactly."""
    lhs = jnp.einsum('bnft,t->bnf', x, w1)
    lhs = jnp.einsum('bnf,ft->bnt', lhs, w2)
    rhs = jnp.einsum('f,bnft->bnt', w3, x)
    rhs = jnp.swapaxes(rhs, -1, -2)                       # (B, T, N)
    product = jnp.einsum('bnt,btm->bnm', lhs, rhs)        # (B, N, N)
    S = jnp.einsum('nm,bmk->bnk', vs, jax.nn.sigmoid(product + bs))
    return jax.nn.softmax(S, axis=1)


if __name__ == "__main__":
    # Shapes consistent with the module: N=16 vertices, F=4 channels, T=8 steps.
    N, F, T = 16, 4, 8
    key = jax.random.PRNGKey(0)
    kx, k1, k2, kw3, kb, kv, kx2 = jax.random.split(key, 7)

    W1 = jax.random.normal(k1, (T,), dtype=jnp.float32) * 0.1
    W2 = jax.random.normal(k2, (F, T), dtype=jnp.float32) * 0.1
    W3 = jax.random.normal(kw3, (F,), dtype=jnp.float32) * 0.1
    bs = jax.random.normal(kb, (1, N, N), dtype=jnp.float32) * 0.1
    Vs = jax.random.normal(kv, (N, N), dtype=jnp.float32) * 0.1

    # Primary small case: B=2.
    B = 2
    x = jax.random.normal(kx, (B, N, F, T), dtype=jnp.float32)
    out = jax.block_until_ready(spatial_attention(x, W1, W2, W3, bs, Vs))
    ref = spatial_attention_reference(x, W1, W2, W3, bs, Vs)
    assert out.shape == (B, N, N)
    assert jnp.allclose(out, ref, atol=1e-3, rtol=1e-3), "mismatch vs reference (B=2)"

    # Second case exercising batch tiling (Bt > 1), >= 8 grid steps, and padding.
    B2 = 37
    x2 = jax.random.normal(kx2, (B2, N, F, T), dtype=jnp.float32)
    out2 = jax.block_until_ready(spatial_attention(x2, W1, W2, W3, bs, Vs))
    ref2 = spatial_attention_reference(x2, W1, W2, W3, bs, Vs)
    assert out2.shape == (B2, N, N)
    assert jnp.allclose(out2, ref2, atol=1e-3, rtol=1e-3), "mismatch vs reference (B=37)"

    print("KERNEL_OK")
</pallas_src>

<mosaic_0001>
module attributes {stable_mosaic.version = 11 : i64} {
  func.func @_spatial_attention_kernel(%arg0: i32, %arg1: memref<16x32xf32, #tpu.memory_space<vmem>>, %arg2: memref<32x8xf32, #tpu.memory_space<vmem>>, %arg3: memref<32x8xf32, #tpu.memory_space<vmem>>, %arg4: memref<16x16xf32, #tpu.memory_space<vmem>>, %arg5: memref<16x16xf32, #tpu.memory_space<vmem>>, %arg6: memref<1x16x16xf32, #tpu.memory_space<vmem>>) attributes {dimension_semantics = [#tpu.dimension_semantics<parallel>], iteration_bounds = array<i64: 2>, scalar_prefetch = 0 : i64, scratch_operands = 0 : i64, tpu.core_type = #tpu.core_type<tc>, window_params = [{transform_indices = @transform_0, window_bounds = array<i64: 16, 32>}, {pipeline_mode = #tpu.pipeline_mode<synchronous>, transform_indices = @transform_1, window_bounds = array<i64: 32, 8>}, {pipeline_mode = #tpu.pipeline_mode<synchronous>, transform_indices = @transform_2, window_bounds = array<i64: 32, 8>}, {pipeline_mode = #tpu.pipeline_mode<synchronous>, transform_indices = @transform_3, window_bounds = array<i64: 16, 16>}, {pipeline_mode = #tpu.pipeline_mode<synchronous>, transform_indices = @transform_4, window_bounds = array<i64: 16, 16>}, {transform_indices = @transform_5, window_bounds = array<i64: 1, 16, 16>}]} {
    %c0 = arith.constant 0 : index
    %c0_0 = arith.constant 0 : index
    %0 = vector.load %arg1[%c0, %c0_0] : memref<16x32xf32, #tpu.memory_space<vmem>>, vector<16x32xf32>
    %c0_1 = arith.constant 0 : index
    %c0_2 = arith.constant 0 : index
    %1 = vector.load %arg2[%c0_1, %c0_2] : memref<32x8xf32, #tpu.memory_space<vmem>>, vector<32x8xf32>
    %c0_3 = arith.constant 0 : index
    %c0_4 = arith.constant 0 : index
    %2 = vector.load %arg3[%c0_3, %c0_4] : memref<32x8xf32, #tpu.memory_space<vmem>>, vector<32x8xf32>
    %c0_5 = arith.constant 0 : index
    %c0_6 = arith.constant 0 : index
    %3 = vector.load %arg4[%c0_5, %c0_6] : memref<16x16xf32, #tpu.memory_space<vmem>>, vector<16x16xf32>
    %c0_7 = arith.constant 0 : index
    %c0_8 = arith.constant 0 : index
    %4 = vector.load %arg5[%c0_7, %c0_8] : memref<16x16xf32, #tpu.memory_space<vmem>>, vector<16x16xf32>
    %cst = arith.constant dense<0.000000e+00> : vector<16x8xf32>
    %5 = tpu.matmul %0, %1, %cst {dimension_numbers = #tpu.dot_dimension_numbers<[1], [0], [0], [1], [0, 0, 1, 1], [], []>} : vector<16x32xf32>, vector<32x8xf32>, vector<16x8xf32> -> vector<16x8xf32>
    %cst_9 = arith.constant dense<0.000000e+00> : vector<16x8xf32>
    %6 = tpu.matmul %0, %2, %cst_9 {dimension_numbers = #tpu.dot_dimension_numbers<[1], [0], [0], [1], [0, 0, 1, 1], [], []>} : vector<16x32xf32>, vector<32x8xf32>, vector<16x8xf32> -> vector<16x8xf32>
    %7 = vector.shape_cast %5 : vector<16x8xf32> to vector<1x16x8xf32>
    %8 = vector.shape_cast %6 : vector<16x8xf32> to vector<1x16x8xf32>
    %cst_10 = arith.constant dense<0.000000e+00> : vector<1x16x16xf32>
    %9 = tpu.matmul %7, %8, %cst_10 {dimension_numbers = #tpu.dot_dimension_numbers<[2], [2], [1], [1], [0, 0, 0, 1, 1, 1], [0], [0]>} : vector<1x16x8xf32>, vector<1x16x8xf32>, vector<1x16x16xf32> -> vector<1x16x16xf32>
    %10 = vector.shape_cast %3 : vector<16x16xf32> to vector<1x16x16xf32>
    %11 = arith.addf %9, %10 : vector<1x16x16xf32>
    %12 = arith.negf %11 : vector<1x16x16xf32>
    %13 = math.exp %12 : vector<1x16x16xf32>
    %cst_11 = arith.constant 1.000000e+00 : f32
    %14 = vector.broadcast %cst_11 : f32 to vector<1x16x16xf32>
    %15 = arith.addf %14, %13 : vector<1x16x16xf32>
    %16 = arith.divf %14, %15 : vector<1x16x16xf32>
    %17 = vector.shape_cast %4 : vector<16x16xf32> to vector<1x16x16xf32>
    %cst_12 = arith.constant dense<0.000000e+00> : vector<1x16x16xf32>
    %18 = tpu.matmul %17, %16, %cst_12 {dimension_numbers = #tpu.dot_dimension_numbers<[2], [1], [1], [2], [0, 0, 0, 1, 1, 2], [0], [0]>} : vector<1x16x16xf32>, vector<1x16x16xf32>, vector<1x16x16xf32> -> vector<1x16x16xf32>
    %cst_13 = arith.constant dense<0xFF800000> : vector<1x16xf32>
    %19 = vector.multi_reduction <maximumf>, %18, %cst_13 [1] : vector<1x16x16xf32> to vector<1x16xf32>
    %20 = vector.shape_cast %19 : vector<1x16xf32> to vector<1x1x16xf32>
    %21 = vector.broadcast %20 : vector<1x1x16xf32> to vector<1x16x16xf32>
    %22 = arith.subf %18, %21 : vector<1x16x16xf32>
    %23 = math.exp %22 : vector<1x16x16xf32>
    %cst_14 = arith.constant dense<0.000000e+00> : vector<1x16xf32>
    %24 = vector.multi_reduction <add>, %23, %cst_14 [1] : vector<1x16x16xf32> to vector<1x16xf32>
    %25 = vector.shape_cast %24 : vector<1x16xf32> to vector<1x1x16xf32>
    %26 = tpu.reciprocal %25 {approx = true} : vector<1x1x16xf32> -> vector<1x1x16xf32>
    %27 = vector.broadcast %26 : vector<1x1x16xf32> to vector<1x16x16xf32>
    %28 = arith.mulf %23, %27 : vector<1x16x16xf32>
    %c0_15 = arith.constant 0 : index
    %c0_16 = arith.constant 0 : index
    %c0_17 = arith.constant 0 : index
    %29 = vector.load %arg6[%c0_15, %c0_16, %c0_17] : memref<1x16x16xf32, #tpu.memory_space<vmem>>, vector<1x16x16xf32>
    tpu.vector_store %arg6[%c0_15, %c0_16, %c0_17], %28 {strides = array<i32>} : memref<1x16x16xf32, #tpu.memory_space<vmem>>, vector<1x16x16xf32>,
    return
  }
  func.func @transform_0(%arg0: i32) -> (i32, i32) {
    %c0_i32 = arith.constant 0 : i32
    %c0_i32_0 = arith.constant 0 : i32
    return %arg0, %c0_i32 : i32, i32
  }
  func.func @transform_1(%arg0: i32) -> (i32, i32) {
    %c0_i32 = arith.constant 0 : i32
    %c0_i32_0 = arith.constant 0 : i32
    %c0_i32_1 = arith.constant 0 : i32
    return %c0_i32, %c0_i32_0 : i32, i32
  }
  func.func @transform_2(%arg0: i32) -> (i32, i32) {
    %c0_i32 = arith.constant 0 : i32
    %c0_i32_0 = arith.constant 0 : i32
    %c0_i32_1 = arith.constant 0 : i32
    return %c0_i32, %c0_i32_0 : i32, i32
  }
  func.func @transform_3(%arg0: i32) -> (i32, i32) {
    %c0_i32 = arith.constant 0 : i32
    %c0_i32_0 = arith.constant 0 : i32
    %c0_i32_1 = arith.constant 0 : i32
    return %c0_i32, %c0_i32_0 : i32, i32
  }
  func.func @transform_4(%arg0: i32) -> (i32, i32) {
    %c0_i32 = arith.constant 0 : i32
    %c0_i32_0 = arith.constant 0 : i32
    %c0_i32_1 = arith.constant 0 : i32
    return %c0_i32, %c0_i32_0 : i32, i32
  }
  func.func @transform_5(%arg0: i32) -> (i32, i32, i32) {
    %c0_i32 = arith.constant 0 : i32
    %c0_i32_0 = arith.constant 0 : i32
    %c0_i32_1 = arith.constant 0 : i32
    return %arg0, %c0_i32, %c0_i32_0 : i32, i32, i32
  }
}

</mosaic_0001>

<bundles_post_ra>
// kernel: tpu_custom_call.1
= control target key start
LH: loop header
LB: loop body
LE: loop exit
PB: predicated region body
PF: predicated region fallthrough
CT: control target
= control target key end

     0   :  { %10 = vsyncpa [#allocation3], 0  ;;  %s1059_s0 = inlined_call_operand.vmem [shape: f32[32,32], index: 0, kind: input, shape index: {}]   ;;  %s1060_s1 = inlined_call_operand.vmem [shape: f32[32,8], index: 1, kind: input, shape index: {}]   ;;  %s1061_s2 = inlined_call_operand.vmem [shape: f32[32,8], index: 2, kind: input, shape index: {}]   ;;  %s1062_s3 = inlined_call_operand.vmem [shape: f32[16,16], index: 3, kind: input, shape index: {}]   ;;  %s1063_s4 = inlined_call_operand.vmem [shape: f32[16,16], index: 4, kind: input, shape index: {}]   ;;  %s1064_s5 = inlined_call_operand.hbm [shape: f32[2,16,16], index: 5, kind: output, shape index: {}]  }
   0x1   :  { %12 = vsyncpa [#allocation3 + $0x1], 0  ;;  %s914_s18 = smov 0   ;;  %s916_s19 = smov 0  }
   0x2   :  { %s918_s20 = smov 0   ;;  %s920_s21 = smov 0  }
   0x3 LB: > { %s935_s22 = sadd.s32 4294967295, %s879_s21   ;;  %s683_s23 = sadd.s32 4294967294, %s879_s21   ;;  %s879_s21 = sphi %s920_s21, %s1070_s21   ;;  %s875_s20 = sphi %s918_s20, %s1069_s20   ;;  %s871_s19 = sphi %s916_s19, %s1068_s19   ;;  %s867_s18 = sphi %s914_s18, %s1067_s18  }
   0x4   : > { %s939_s24 = sadd.s32 1, %s879_s21   ;;  %s135_s25 = sadd.s32 1, %s875_s20 }
   0x5   : > { %s132_s26 = ssub.s32 %s879_s21, %s939_s24  ;;  %p145_p0 = scmp.ne.s32.totalorder %s875_s20, %s871_s19 }
   0x6   : > { %p133_p1 = scmp.eq.s32.totalorder %s132_s26, 0  ;;  %p146_p2 = scmp.eq.s32.totalorder %s935_s22, 1 }
   0x7   : > { %p151_p3 = scmp.ne.s32.totalorder %s871_s19, %s867_s18  ;;  %p152_p4 = scmp.eq.s32.totalorder %s683_s23, 1 }
   0x8   : > { %s950_s27 = scalar_select %p133_p1, %s875_s20, %s135_s25  }
   0x9   : > { %p952_p5 = por %p146_p2, %p145_p0  ;;  %p956_p6 = por %p152_p4, %p151_p3 }
   0xa   : > { %p686_p7 = scmp.ge.s32.totalorder %s879_s21, 1  ;;  %p191_p8 = scmp.lt.s32.totalorder %s879_s21, 3 }
   0xc   : > { %p192_p9 = pnand %p686_p7, %p191_p8 }
   0xd   : > { %s688_s11 = sshll.u32 (!%p192_p9), %s935_s22, 1  ;;  %s216_s23 = sand.u32 (!%p192_p9), 1, %s871_s19  }
   0xe   : > { %195 = sbr.rel (%p192_p9) target bundleno = 735 (0x2df), region = 40  ;;  %p220_p10 = scmp.lt.s32.totalorder (!%p192_p9), %s688_s11, 3 }
   0xf   : > { %s687_s25 = sshll.u32 (!%p192_p9), %s216_s23, 4  ;;  %s707_s26 = sshll.u32 (!%p192_p9), %s935_s22, 8 }
  0x10   : > { %s218_s30 = scalar_lea.vmem (!%p192_p9), [#allocation2], %s687_s25  ;;  %s1019_s22 = scalar_lea.sflag (!%p192_p9), [#allocation3], %s216_s23 }
  0x13   : > { %v234_v0 = vld [vmem:[%s1061_s2 + $0x18] sm:$0xff]  ;;  %v233_v1 = vld [vmem:[%s1061_s2 + $0x10] sm:$0xff]  ;;  %v232_v4 = vld [vmem:[%s1061_s2 + $0x8] sm:$0xff]  ;;  %s1072_s11 = smov (!%p220_p10, %s688_s11), 3  ;;  %vm239_vm0 = vcmask 261120   ;;  %vm396_vm1 = vcmask 64512  }
  0x14   : > { %v230_v2 = vld [vmem:[%s1060_s1 + $0x18] sm:$0xff]  ;;  %739 = vmatprep.subr.mxu1 %v234_v0  ;;  %v229_v3 = vld [vmem:[%s1060_s1 + $0x10] sm:$0xff]  ;;  %v228_v5 = vld [vmem:[%s1060_s1 + $0x8] sm:$0xff]  ;;  %s689_s6 = sshll.u32 %s1072_s11, 3  ;;  %vm496_vm2 = vcmask 130048   ;;  %s881_s11 = smov [#allocation2]  }
  0x15   : > { %728 = vmatprep.subr.mxu0 %v230_v2  ;;  %740 = vmatpush3.msra.mxu1 %v234_v0  ;;  %v231_v6 = vld [vmem:[%s1061_s2] sm:$0xff]  ;;  %s223_s9 = scalar_lea.vmem %s1059_s0, %s689_s6  ;;  %v236_v15 = vld [vmem:[%s1062_s3 + $0x8] sm:$0xff]  ;;  %s621_s6 = sshll.u32 %s218_s30, 4  ;;  %s1015_s6 = int_to_ptr.vmem [resolvable:$true] %s621_s6 }
  0x16   : > { %729 = vmatpush3.msra.mxu0 %v230_v2  ;;  %741 = vmatprep.subr.mxu1 %v233_v1  ;;  %v227_v7 = vld [vmem:[%s1060_s1] sm:$0xff]  ;;  %v226_v9 = vld [vmem:[%s223_s9 + $0x8] sm:$0xff]  ;;  %s819_s10 = scalar_lea.vmem %s1015_s6, 256  ;;  %s823_s12 = sshll.u32 %s881_s11, 4  ;;  %s824_s12 = int_to_ptr.vmem [resolvable:$false] %s823_s12 }
  0x17   : > { %730 = vmatprep.subr.mxu0 %v229_v3  ;;  %742 = vmatpush3.msra.mxu1 %v233_v1  ;;  %v225_v8 = vld [vmem:[%s223_s9] sm:$0xff]  ;;  %v238_v29 = vld [vmem:[%s1063_s4 + $0x8] sm:$0xff]  ;;  %s1013_s9 = scalar_lea.hbm %s1064_s5, %s707_s26  ;;  %p820_p11 = scmp.ne.s32.totalorder %s1015_s6, %s819_s10 }
  0x18   : > { %731 = vmatpush3.msra.mxu0 %v229_v3  ;;  %743 = vmatprep.subr.mxu1 %v232_v4  ;;  %v237_v14 = vld [vmem:[%s1063_s4] sm:$0xff]  ;;  %s825_s13 = scalar_lea.vmem %s824_s12, 512  ;;  %p826_p0 = scmp.lt.s32.totalorder %s1015_s6, %s824_s12 }
  0x19   : > { %732 = vmatprep.subr.mxu0 %v228_v5  ;;  %744 = vmatpush3.msra.mxu1 %v232_v4  ;;  %v235_v17 = vld [vmem:[%s1062_s3] sm:$0xff]  ;;  %p821_p12 = pnand %p820_p11, %p952_p5  ;;  %p827_p1 = scmp.lt.s32.totalorder %s825_s13, %s819_s10 }
  0x1a   : > { %733 = vmatpush3.msra.mxu0 %v228_v5  ;;  %745 = vmatprep.subr.mxu1 %v231_v6 }
  0x1b   : > { %734 = vmatprep.subr.mxu0 %v227_v7  ;;  %746 = vmatpush3.msra.mxu1 %v231_v6  ;;  %p822_p13 = pneg %p821_p12  ;;  %p828_p2 = por %p827_p1, %p826_p0 }
  0x1c   : > { %747 = vmatprep.mubr.msk.f32.mxu1 %vm239_vm0, %v225_v8  ;;  %735 = vmatpush3.msra.mxu0 %v227_v7 }
  0x1d   : > { %748 = vmatmul.mubr.msk.f32.vlgmr.msra.gmra.mxu1 %vm239_vm0, %v226_v9  ;;  %736 = vmatprep.mubr.msk.f32.mxu0 %vm239_vm0, %v225_v8  ;;  %p829_p3 = pnand %p828_p2, %p822_p13 }
  0x1e   : > { %737 = vmatmul.mubr.msk.f32.vlgmr.msra.gmra.mxu0 %vm239_vm0, %v226_v9  ;;  %761 = vmatprep.mubr.msk.f32.mxu1 %vm496_vm2, %v237_v14 }
  0xdd   : > { %v749_v10 = vpop.f32.mrf.mxu1 }
  0xde   : > { %750 = vmatprep.subr.msk.mxu0 %vm396_vm1, %v749_v10  ;;  %v738_v12 = vpop.f32.mrf.mxu0 }
  0xdf   : > { %v387_v11 = vpop.f32.mrf.mxu1  ;;  %751 = vmatpush3.xpose.msk.msra.mxu0 %vm396_vm1, %v749_v10 }
  0xe0   : > { %752 = vmatprep.subr.msk.mxu0 %vm396_vm1, %v387_v11  ;;  %v312_v13 = vpop.f32.mrf.mxu0 }
  0xe1   : > { %754 = vmatprep.mubr.msk.f32.mxu0 %vm396_vm1, %v312_v13 }
  0xe3   : > { %753 = vmatpush3.xpose.msk.msra.mxu0 %vm396_vm1, %v387_v11 }
  0xe6   : > { %755 = vmatmul.mubr.msk.f32.vlgmr.msra.gmra.mxu0 %vm396_vm1, %v738_v12 }
 0x1a6   : > { %v756_v16 = vpop.f32.mrf.mxu0 }
 0x1a7   : > { %v481_v18 = vadd.f32 %v756_v16, %v236_v15 }
 0x1a8   : > { %v475_v19 = vpop.f32.mrf.mxu0 }
 0x1a9   : > { %v699_v20 = vmul.f32 -1.442695, %v481_v18  ;;  %v476_v21 = vadd.f32 %v475_v19, %v235_v17 }
 0x1ab   : > { %805 = vpow2.f32 %v699_v20  ;;  %v698_v22 = vmul.f32 -1.442695, %v476_v21 }
 0x1ad   : > { %807 = vpow2.f32 %v698_v22 }
 0x1b8   : > { %v806_v23 = vpop.eup %805 }
 0x1b9   : > { %v491_v24 = vadd.f32 1.0, %v806_v23 }
 0x1ba   : > { %v808_v25 = vpop.eup %807 }
 0x1bb   : > { %809 = vrcp.f32 %v491_v24  ;;  %v490_v26 = vadd.f32 1.0, %v808_v25 }
 0x1bd   : > { %811 = vrcp.f32 %v490_v26 }
 0x1c8   : > { %v810_v27 = vpop.eup %809 }
 0x1c9   : > { %757 = vmatprep.subr.mxu1 %v810_v27 }
 0x1ca   : > { %v812_v28 = vpop.eup %811  ;;  %758 = vmatpush3.msra.mxu1 %v810_v27 }
 0x1cb   : > { %759 = vmatprep.subr.mxu1 %v812_v28 }
 0x1cc   : > { %760 = vmatpush3.msra.mxu1 %v812_v28 }
 0x1cd   : > { %762 = vmatmul.mubr.msk.f32.vlgmr.msra.gmra.mxu1 %vm496_vm2, %v238_v29 }
 0x28d   : > { %v763_v30 = vpop.f32.mrf.mxu1 }
 0x28e   : > { %v579_v32 = vsel %vm496_vm2, %v763_v30, -inf }
 0x28f   : > { %v569_v31 = vpop.f32.mrf.mxu1 }
 0x290   : > { %v578_v33 = vsel %vm496_vm2, %v569_v31, -inf }
 0x291   : > { %v580_v34 = vmax.f32 %v578_v33, %v579_v32 }
 0x293   : > { %v581_v35 = vrot.slane %v580_v34, 4 }
 0x295   : > { %v582_v36 = vmax.f32 %v580_v34, %v581_v35 }
 0x297   : > { %v583_v37 = vrot.slane %v582_v36, 2 }
 0x299   : > { %v584_v38 = vmax.f32 %v582_v36, %v583_v37 }
 0x29b   : > { %v585_v39 = vrot.slane %v584_v38, 1 }
 0x29d   : > { %v586_v40 = vmax.f32 %v584_v38, %v585_v39 }
 0x29f   : > { %v587_v41 = vsub.f32 %v569_v31, %v586_v40  ;;  %v588_v42 = vsub.f32 %v763_v30, %v586_v40 }
 0x2a1   : > { %v589_v43 = vmul.f32 1.442695, %v587_v41  ;;  %v591_v44 = vmul.f32 1.442695, %v588_v42 }
 0x2a3   : > { %813 = vpow2.f32 %v589_v43 }
 0x2a4   : > { %815 = vpow2.f32 %v591_v44 }
 0x2b0   : > { %v814_v45 = vpop.eup %813 }
 0x2b1   : > { %v816_v46 = vpop.eup %815  ;;  %v593_v47 = vsel %vm496_vm2, %v814_v45, 0.0 }
 0x2b2   : > { %v594_v48 = vsel %vm496_vm2, %v816_v46, 0.0 }
 0x2b3   : > { %v595_v49 = vadd.f32 %v594_v48, %v593_v47 }
 0x2b5   : > { %v596_v50 = vrot.slane %v595_v49, 4 }
 0x2b7   : > { %v597_v51 = vadd.f32 %v596_v50, %v595_v49 }
 0x2b9   : > { %v598_v52 = vrot.slane %v597_v51, 2 }
 0x2bb   : > { %v599_v53 = vadd.f32 %v598_v52, %v597_v51 }
 0x2bd   : > { %v600_v54 = vrot.slane %v599_v53, 1 }
 0x2bf   : > { %v601_v55 = vadd.f32 %v600_v54, %v599_v53 }
 0x2c1   : > { %817 = vrcp.f32 %v601_v55 }
 0x2ce   : > { %v818_v56 = vpop.eup %817 }
 0x2cf   : > { %v603_v57 = vmul.f32 %v818_v56, %v814_v45  ;;  %v604_v58 = vmul.f32 %v818_v56, %v816_v46 }
 0x2d1   : > { %605 = vst.msk [vmem:[%s218_s30] sm:$0xff] %vm496_vm2, %v603_v57  ;;  %606 = vst.msk [vmem:[%s218_s30 + $0x8] sm:$0xff] %vm496_vm2, %v604_v58 }
 0x2d2   : > { %832 = shalt.err (!%p829_p3)
}
 0x2d3   : > { %s833_s14 = scalar_lea.hbm %s1013_s9, 256  ;;  %s837_s17 = scalar_lea.hbm %s1064_s5, 512 }
 0x2d4   : > { %p834_p4 = scmp.ne.s32.totalorder %s1013_s9, %s833_s14  ;;  %p838_p9 = scmp.lt.s32.totalorder %s1013_s9, %s1064_s5 }
 0x2d5   : > { %p839_p10 = scmp.lt.s32.totalorder %s837_s17, %s833_s14 }
 0x2d6   : > { %p835_p7 = pnand %p834_p4, %p952_p5 }
 0x2d7   : > { %p840_p11 = por %p839_p10, %p838_p9 }
 0x2d8   : > { %p836_p8 = pneg %p835_p7 }
 0x2da   : > { %p841_p12 = pnand %p840_p11, %p836_p8 }
 0x2dc   : > { %844 = shalt.err (!%p841_p12)
}
 0x2dd   : > { %s882_s26 = smov 128   ;;  %s883_s30 = smov 8  }
 0x2de   : > { %764 = dma.vmem_to_hbm [thread:$0]  (%p952_p5), %s1015_s6, 256, %s1013_s9, %s1019_s22, %s882_s26, %s882_s26, %s883_s30  }
 0x2df PF: > { %p770_p13 = scmp.ge.s32.totalorder %s879_s21, 2  ;;  %s636_s7 = sand.u32 1, %s867_s18  }
 0x2e0   : > { %s637_s8 = scalar_lea.sflag [#allocation3], %s636_s7 }
 0x2e1   : > { %p767_p0 = pnand %p770_p13, %p956_p6 }
 0x2e3   : > { %p768_p1 = pneg %p767_p0 }
 0x2e5   : > { %862 = dma.done.wait (%p768_p1), %s637_s8, 256  }
 0x2e6   : > { %864 = vsyncadd (%p768_p1), %s637_s8, 4294967040  ;;  %p15_p2 = scmp.ge.s32.totalorder %s939_s24, 4   ;;  %s1067_s18 = smov %s871_s19 }
 0x2e7   : > { %s1068_s19 = smov %s875_s20  ;;  %s1069_s20 = smov %s950_s27 }
 0x2e8   : > { %s1070_s21 = smov %s939_s24  ;;  %17 = sbr.rel (!%p15_p2) target bundleno = 3 (0x3), region = 75 }
 0x2ed   :  { %642 = vsyncpa [#allocation3], 1 }
 0x2ee   :  { %644 = vsyncpa [#allocation3 + $0x1], 1 }

</bundles_post_ra>
